<compile_context>
chip_gen: v7x
topology: tpu7x:2x2x1
jax: 0.10.0
libtpu: 0.0.40
codegen_flags: <defaults>
</compile_context>

<pallas_src>
import math

import jax
import jax.numpy as jnp
from jax.experimental import pallas as pl
from jax.experimental.pallas import tpu as pltpu


# Channel thresholds below which the VPU MAC path beats a padded MXU matmul.
_VPU_MAX_CIN = 32
_VPU_MAX_COUT = 64

# Max lanes held live in the f32 accumulator (C_out x 2048 f32 ~= 16 vregs @ C_out=8).
_LANE_CHUNK = 2048

_T_TILE_CANDIDATES = (65536, 32768, 16384, 8192, 4096, 2048, 1024, 512, 256, 128)


def _round_up(n, m):
    return ((n + m - 1) // m) * m


def _sublane_multiple(itemsize):
    # f32 -> 8 sublanes/vreg, bf16 -> 16, int8 -> 32.
    return 8 * max(1, 4 // itemsize)


def _vmem_capacity_bytes():
    try:
        info = pltpu.get_tpu_info()
        cap = getattr(info, "vmem_capacity_bytes", None)
        if cap:
            return int(cap)
    except Exception:
        pass
    return 64 * 1024 * 1024  # conservative (v7x physical VMEM)


def _choose_b_block(B, c_in, c_out, itemsize, budget):
    """Largest divisor of B whose double-buffered blocks fit the budget at >=512 lanes."""
    sub = _sublane_multiple(itemsize)
    row_bytes = (_round_up(c_in, sub) + _round_up(c_out, sub)) * itemsize
    for b_blk in range(B, 0, -1):
        if B % b_blk != 0:
            continue
        if 2 * b_blk * row_bytes * 512 <= budget:
            return b_blk
    return 1


def _choose_t_tile(T_pad, b_blk, c_in, c_out, itemsize, budget):
    """Largest 128-multiple divisor of T_pad whose double-buffered blocks fit the budget."""
    sub = _sublane_multiple(itemsize)
    row_bytes = (_round_up(c_in, sub) + _round_up(c_out, sub)) * itemsize
    candidates = set(_T_TILE_CANDIDATES)
    if T_pad <= 65536:
        candidates.add(T_pad)  # T_pad is always a multiple of 128
    for cand in sorted(candidates, reverse=True):
        if T_pad % cand != 0:
            continue
        if 2 * b_blk * row_bytes * cand <= budget:  # in + out, double-buffered
            return cand
    return 128


def _largest_lane_chunk(t_tile):
    for c in (_LANE_CHUNK, 1024, 512, 256, 128):
        if t_tile % c == 0:
            return c
    return t_tile


def _cond_bias_kernel(x_ref, w_ref, b_ref, o_ref):
    # x_ref: (b_blk, C_in, tT)   w_ref: (C_out, C_in)   b_ref: (C_out, 1)
    # o_ref: (b_blk, C_out, tT)
    b_blk, c_in, t_tile = x_ref.shape
    c_out = w_ref.shape[0]

    # Hoisted once per grid step (not per-ci / per-chunk): cast + column split.
    w = w_ref[...].astype(jnp.float32)          # (C_out, C_in)
    bias = b_ref[...].astype(jnp.float32)       # (C_out, 1)

    if c_in <= _VPU_MAX_CIN and c_out <= _VPU_MAX_COUT:
        # VPU path: broadcast-MAC over C_in, f32 accumulate, lane-chunked so the
        # live accumulator stays well under the vreg file even for large tiles.
        lane_chunk = _largest_lane_chunk(t_tile)
        n_chunks = t_tile // lane_chunk
        w_cols = [w[:, ci:ci + 1] for ci in range(c_in)]          # each (C_out, 1)
        bias_bcast = jnp.broadcast_to(bias, (c_out, lane_chunk))  # hoisted init

        for bi in range(b_blk):
            if n_chunks == 1:
                xs = x_ref[bi].astype(jnp.float32)                # (C_in, tT)
                acc = bias_bcast
                for ci in range(c_in):
                    acc = acc + w_cols[ci] * xs[ci:ci + 1, :]
                o_ref[bi] = acc.astype(o_ref.dtype)
            else:
                @pl.loop(0, n_chunks)
                def _chunk(ck, _bi=bi):
                    start = pl.multiple_of(ck * lane_chunk, 128)
                    xs = x_ref[_bi, :, pl.ds(start, lane_chunk)].astype(jnp.float32)
                    acc = bias_bcast
                    for ci in range(c_in):
                        acc = acc + w_cols[ci] * xs[ci:ci + 1, :]
                    o_ref[_bi, :, pl.ds(start, lane_chunk)] = acc.astype(o_ref.dtype)
    else:
        # MXU path for large channel counts: (C_out, C_in) @ (C_in, tT).
        for bi in range(b_blk):
            y = jnp.dot(w, x_ref[bi].astype(jnp.float32),
                        preferred_element_type=jnp.float32) + bias
            o_ref[bi] = y.astype(o_ref.dtype)


def conditional_bias(signal, weight, bias, *, t_tile=None):
    """signal: [B, C_in, T]; weight: [C_out, C_in]; bias: [C_out] -> [B, C_out, T]"""
    B, C_in, T = signal.shape
    C_out, C_in_w = weight.shape
    assert C_in_w == C_in
    dtype = signal.dtype
    itemsize = jnp.dtype(dtype).itemsize

    # Pad T to a 128 multiple so every block is lane-dense (unmasked vst).
    T_pad = _round_up(T, 128)
    x = signal
    if T_pad != T:
        x = jnp.pad(signal, ((0, 0), (0, 0), (0, T_pad - T)))

    # Generation-aware VMEM sizing (v7x: 64 MiB physical; v5e/v6e: 128 MiB).
    vmem_cap = _vmem_capacity_bytes()
    tile_budget = vmem_cap // 8
    vmem_limit = int(min(vmem_cap // 2, 64 * 1024 * 1024))

    b_blk = _choose_b_block(B, C_in, C_out, itemsize, tile_budget)
    auto_tile = t_tile is None
    if auto_tile:
        t_tile = _choose_t_tile(T_pad, b_blk, C_in, C_out, itemsize, tile_budget)
    else:
        assert t_tile % 128 == 0 and T_pad % t_tile == 0, \
            "t_tile must be a multiple of 128 that divides the padded T"
    n_t = T_pad // t_tile

    # Megacore balance: if the grid collapsed to one step, split the T tile so
    # both TensorCores get work (only when the halved tile stays 128-aligned).
    if auto_tile and (B // b_blk) == 1 and n_t == 1 and t_tile % 256 == 0:
        t_tile //= 2
        n_t = 2

    b_2d = bias.reshape(C_out, 1)  # (C_out, 1): broadcasts along lanes (T)

    cost = pl.CostEstimate(
        flops=2 * B * C_in * C_out * T_pad,
        transcendentals=0,
        bytes_accessed=(B * (C_in + C_out) * T_pad + C_out * C_in + C_out) * itemsize,
    )

    out = pl.pallas_call(
        _cond_bias_kernel,
        out_shape=jax.ShapeDtypeStruct((B, C_out, T_pad), dtype),
        grid_spec=pltpu.PrefetchScalarGridSpec(
            num_scalar_prefetch=0,
            grid=(B // b_blk, n_t),
            in_specs=[
                pl.BlockSpec((b_blk, C_in, t_tile), lambda bb, t: (bb, 0, t)),
                pl.BlockSpec((C_out, C_in), lambda bb, t: (0, 0)),
                pl.BlockSpec((C_out, 1), lambda bb, t: (0, 0)),
            ],
            out_specs=pl.BlockSpec((b_blk, C_out, t_tile), lambda bb, t: (bb, 0, t)),
        ),
        compiler_params=pltpu.CompilerParams(
            dimension_semantics=("parallel", "parallel"),
            vmem_limit_bytes=vmem_limit,
        ),
        cost_estimate=cost,
    )(x, weight, b_2d)

    if T_pad != T:
        out = out[:, :, :T]
    return out


def _reference(signal, weight, bias):
    return jnp.einsum("bct,oc->bot", signal, weight) + bias[None, :, None]


if __name__ == "__main__":
    B, C_in, C_out, T = 2, 4, 8, 16

    key = jax.random.PRNGKey(0)
    k_sig, k_w, k_b, k_sig2, k_sig3 = jax.random.split(key, 5)

    # PyTorch nn.Linear-style uniform(-1/sqrt(in), 1/sqrt(in)) init.
    bound = 1.0 / math.sqrt(C_in)
    weight = jax.random.uniform(k_w, (C_out, C_in), jnp.float32, -bound, bound)
    bias = jax.random.uniform(k_b, (C_out,), jnp.float32, -bound, bound)

    # Case 1: tiny T (not a 128 multiple) -> padded to one lane-dense 128 block.
    signal = jax.random.normal(k_sig, (B, C_in, T), jnp.float32)
    out = jax.block_until_ready(conditional_bias(signal, weight, bias))
    ref = _reference(signal, weight, bias)
    assert out.shape == (B, C_out, T)
    assert jnp.allclose(out, ref, atol=1e-5, rtol=1e-5)

    # Case 2: explicit small tile with multiple T tiles (tiled grid path).
    T2 = 256
    signal2 = jax.random.normal(k_sig2, (B, C_in, T2), jnp.float32)
    out2 = jax.block_until_ready(
        conditional_bias(signal2, weight, bias, t_tile=128))
    ref2 = _reference(signal2, weight, bias)
    assert out2.shape == (B, C_out, T2)
    assert jnp.allclose(out2, ref2, atol=1e-5, rtol=1e-5)

    # Case 3: longer T with auto tiling -> folded batch, big tile, lane-chunked
    # accumulator loop (exercises the pl.loop / pl.ds path).
    T3 = 8192
    signal3 = jax.random.normal(k_sig3, (B, C_in, T3), jnp.float32)
    out3 = jax.block_until_ready(conditional_bias(signal3, weight, bias))
    ref3 = _reference(signal3, weight, bias)
    assert out3.shape == (B, C_out, T3)
    assert jnp.allclose(out3, ref3, atol=1e-5, rtol=1e-5)

    print("KERNEL_OK")
</pallas_src>

<mosaic_0001>
module attributes {stable_mosaic.version = 11 : i64} {
  func.func @_cond_bias_kernel(%arg0: i32, %arg1: i32, %arg2: memref<2x4x128xf32, #tpu.memory_space<vmem>>, %arg3: memref<8x4xf32, #tpu.memory_space<vmem>>, %arg4: memref<8x1xf32, #tpu.memory_space<vmem>>, %arg5: memref<2x8x128xf32, #tpu.memory_space<vmem>>) attributes {dimension_semantics = [#tpu.dimension_semantics<parallel>, #tpu.dimension_semantics<parallel>], iteration_bounds = array<i64: 1, 1>, scalar_prefetch = 0 : i64, scratch_operands = 0 : i64, tpu.core_type = #tpu.core_type<tc>, window_params = [{transform_indices = @transform_0, window_bounds = array<i64: 2, 4, 128>}, {pipeline_mode = #tpu.pipeline_mode<synchronous>, transform_indices = @transform_1, window_bounds = array<i64: 8, 4>}, {pipeline_mode = #tpu.pipeline_mode<synchronous>, transform_indices = @transform_2, window_bounds = array<i64: 8, 1>}, {transform_indices = @transform_3, window_bounds = array<i64: 2, 8, 128>}]} {
    %c0 = arith.constant 0 : index
    %c0_0 = arith.constant 0 : index
    %0 = vector.load %arg3[%c0, %c0_0] : memref<8x4xf32, #tpu.memory_space<vmem>>, vector<8x4xf32>
    %c0_1 = arith.constant 0 : index
    %c0_2 = arith.constant 0 : index
    %1 = vector.load %arg4[%c0_1, %c0_2] : memref<8x1xf32, #tpu.memory_space<vmem>>, vector<8x1xf32>
    %2 = vector.extract_strided_slice %0 {offsets = [0, 0], sizes = [8, 1], strides = [1, 1]} : vector<8x4xf32> to vector<8x1xf32>
    %3 = vector.extract_strided_slice %0 {offsets = [0, 1], sizes = [8, 1], strides = [1, 1]} : vector<8x4xf32> to vector<8x1xf32>
    %4 = vector.extract_strided_slice %0 {offsets = [0, 2], sizes = [8, 1], strides = [1, 1]} : vector<8x4xf32> to vector<8x1xf32>
    %5 = vector.extract_strided_slice %0 {offsets = [0, 3], sizes = [8, 1], strides = [1, 1]} : vector<8x4xf32> to vector<8x1xf32>
    %6 = vector.shape_cast %1 : vector<8x1xf32> to vector<8x1xf32>
    %7 = vector.broadcast %6 : vector<8x1xf32> to vector<8x128xf32>
    %c0_3 = arith.constant 0 : index
    %c0_4 = arith.constant 0 : index
    %c0_5 = arith.constant 0 : index
    %8 = vector.load %arg2[%c0_3, %c0_4, %c0_5] : memref<2x4x128xf32, #tpu.memory_space<vmem>>, vector<1x4x128xf32>
    %9 = vector.shape_cast %8 : vector<1x4x128xf32> to vector<4x128xf32>
    %10 = vector.extract_strided_slice %9 {offsets = [0, 0], sizes = [1, 128], strides = [1, 1]} : vector<4x128xf32> to vector<1x128xf32>
    %11 = vector.broadcast %2 : vector<8x1xf32> to vector<8x128xf32>
    %12 = vector.broadcast %10 : vector<1x128xf32> to vector<8x128xf32>
    %13 = arith.mulf %11, %12 : vector<8x128xf32>
    %14 = arith.addf %7, %13 : vector<8x128xf32>
    %15 = vector.extract_strided_slice %9 {offsets = [1, 0], sizes = [1, 128], strides = [1, 1]} : vector<4x128xf32> to vector<1x128xf32>
    %16 = vector.broadcast %3 : vector<8x1xf32> to vector<8x128xf32>
    %17 = vector.broadcast %15 : vector<1x128xf32> to vector<8x128xf32>
    %18 = arith.mulf %16, %17 : vector<8x128xf32>
    %19 = arith.addf %14, %18 : vector<8x128xf32>
    %20 = vector.extract_strided_slice %9 {offsets = [2, 0], sizes = [1, 128], strides = [1, 1]} : vector<4x128xf32> to vector<1x128xf32>
    %21 = vector.broadcast %4 : vector<8x1xf32> to vector<8x128xf32>
    %22 = vector.broadcast %20 : vector<1x128xf32> to vector<8x128xf32>
    %23 = arith.mulf %21, %22 : vector<8x128xf32>
    %24 = arith.addf %19, %23 : vector<8x128xf32>
    %25 = vector.extract_strided_slice %9 {offsets = [3, 0], sizes = [1, 128], strides = [1, 1]} : vector<4x128xf32> to vector<1x128xf32>
    %26 = vector.broadcast %5 : vector<8x1xf32> to vector<8x128xf32>
    %27 = vector.broadcast %25 : vector<1x128xf32> to vector<8x128xf32>
    %28 = arith.mulf %26, %27 : vector<8x128xf32>
    %29 = arith.addf %24, %28 : vector<8x128xf32>
    %c0_6 = arith.constant 0 : index
    %c0_7 = arith.constant 0 : index
    %c0_8 = arith.constant 0 : index
    %30 = vector.load %arg5[%c0_6, %c0_7, %c0_8] : memref<2x8x128xf32, #tpu.memory_space<vmem>>, vector<1x8x128xf32>
    %31 = vector.shape_cast %30 : vector<1x8x128xf32> to vector<8x128xf32>
    %32 = vector.shape_cast %29 : vector<8x128xf32> to vector<1x8x128xf32>
    tpu.vector_store %arg5[%c0_6, %c0_7, %c0_8], %32 {strides = array<i32>} : memref<2x8x128xf32, #tpu.memory_space<vmem>>, vector<1x8x128xf32>,
    %c1 = arith.constant 1 : index
    %c0_9 = arith.constant 0 : index
    %c0_10 = arith.constant 0 : index
    %33 = vector.load %arg2[%c1, %c0_9, %c0_10] : memref<2x4x128xf32, #tpu.memory_space<vmem>>, vector<1x4x128xf32>
    %34 = vector.shape_cast %33 : vector<1x4x128xf32> to vector<4x128xf32>
    %35 = vector.extract_strided_slice %34 {offsets = [0, 0], sizes = [1, 128], strides = [1, 1]} : vector<4x128xf32> to vector<1x128xf32>
    %36 = vector.broadcast %2 : vector<8x1xf32> to vector<8x128xf32>
    %37 = vector.broadcast %35 : vector<1x128xf32> to vector<8x128xf32>
    %38 = arith.mulf %36, %37 : vector<8x128xf32>
    %39 = arith.addf %7, %38 : vector<8x128xf32>
    %40 = vector.extract_strided_slice %34 {offsets = [1, 0], sizes = [1, 128], strides = [1, 1]} : vector<4x128xf32> to vector<1x128xf32>
    %41 = vector.broadcast %3 : vector<8x1xf32> to vector<8x128xf32>
    %42 = vector.broadcast %40 : vector<1x128xf32> to vector<8x128xf32>
    %43 = arith.mulf %41, %42 : vector<8x128xf32>
    %44 = arith.addf %39, %43 : vector<8x128xf32>
    %45 = vector.extract_strided_slice %34 {offsets = [2, 0], sizes = [1, 128], strides = [1, 1]} : vector<4x128xf32> to vector<1x128xf32>
    %46 = vector.broadcast %4 : vector<8x1xf32> to vector<8x128xf32>
    %47 = vector.broadcast %45 : vector<1x128xf32> to vector<8x128xf32>
    %48 = arith.mulf %46, %47 : vector<8x128xf32>
    %49 = arith.addf %44, %48 : vector<8x128xf32>
    %50 = vector.extract_strided_slice %34 {offsets = [3, 0], sizes = [1, 128], strides = [1, 1]} : vector<4x128xf32> to vector<1x128xf32>
    %51 = vector.broadcast %5 : vector<8x1xf32> to vector<8x128xf32>
    %52 = vector.broadcast %50 : vector<1x128xf32> to vector<8x128xf32>
    %53 = arith.mulf %51, %52 : vector<8x128xf32>
    %54 = arith.addf %49, %53 : vector<8x128xf32>
    %c1_11 = arith.constant 1 : index
    %c0_12 = arith.constant 0 : index
    %c0_13 = arith.constant 0 : index
    %55 = vector.load %arg5[%c1_11, %c0_12, %c0_13] : memref<2x8x128xf32, #tpu.memory_space<vmem>>, vector<1x8x128xf32>
    %56 = vector.shape_cast %55 : vector<1x8x128xf32> to vector<8x128xf32>
    %57 = vector.shape_cast %54 : vector<8x128xf32> to vector<1x8x128xf32>
    tpu.vector_store %arg5[%c1_11, %c0_12, %c0_13], %57 {strides = array<i32>} : memref<2x8x128xf32, #tpu.memory_space<vmem>>, vector<1x8x128xf32>,
    return
  }
  func.func @transform_0(%arg0: i32, %arg1: i32) -> (i32, i32, i32) {
    %c0_i32 = arith.constant 0 : i32
    %c0_i32_0 = arith.constant 0 : i32
    return %arg0, %c0_i32, %arg1 : i32, i32, i32
  }
  func.func @transform_1(%arg0: i32, %arg1: i32) -> (i32, i32) {
    %c0_i32 = arith.constant 0 : i32
    %c0_i32_0 = arith.constant 0 : i32
    %c0_i32_1 = arith.constant 0 : i32
    return %c0_i32, %c0_i32_0 : i32, i32
  }
  func.func @transform_2(%arg0: i32, %arg1: i32) -> (i32, i32) {
    %c0_i32 = arith.constant 0 : i32
    %c0_i32_0 = arith.constant 0 : i32
    %c0_i32_1 = arith.constant 0 : i32
    return %c0_i32, %c0_i32_0 : i32, i32
  }
  func.func @transform_3(%arg0: i32, %arg1: i32) -> (i32, i32, i32) {
    %c0_i32 = arith.constant 0 : i32
    %c0_i32_0 = arith.constant 0 : i32
    return %arg0, %c0_i32, %arg1 : i32, i32, i32
  }
}

</mosaic_0001>

<bundles_post_ra>
// kernel: tpu_custom_call.1
= control target key start
LH: loop header
LB: loop body
LE: loop exit
PB: predicated region body
PF: predicated region fallthrough
CT: control target
= control target key end

     0   :  { %v145_v1 = vmov 0   ;;  %v146_v2 = vmov 1   ;;  %s196_s0 = inlined_call_operand.vmem [shape: f32[2,4,128], index: 0, kind: input, shape index: {}]   ;;  %s197_s1 = inlined_call_operand.vmem [shape: f32[8,4], index: 1, kind: input, shape index: {}]   ;;  %s198_s2 = inlined_call_operand.vmem [shape: f32[8,1], index: 2, kind: input, shape index: {}]   ;;  %s199_s3 = inlined_call_operand.hbm [shape: f32[2,8,128], index: 3, kind: output, shape index: {}]  }
   0x1   :  { %v15_v0 = vld [vmem:[%s197_s1] sm:$0xff]  ;;  %117 = vset.pattern.permute.xlu0 %v145_v1  ;;  %118 = vset.pattern.permute.xlu1 %v146_v2 }
   0x2   :  { %8 = vsyncpa [#allocation3], 0  ;;  %25 = vperm.xlu0 %117, %v15_v0   ;;  %35 = vperm.xlu1 %118, %v15_v0   ;;  %v16_v3 = vld [vmem:[%s198_s2] sm:$0xff]  ;;  %v147_v4 = vmov 2   ;;  %v148_v5 = vmov 3   ;;  %v28_v6 = vlaneseq }
   0x3   :  { %v22_v9 = vld [vmem:[%s196_s0] sm:$0xf]  ;;  %v109_v10 = vld [vmem:[%s196_s0 + $0x4] sm:$0xf]  ;;  %s149_s0 = smov [#allocation2]  }
   0x4   :  { %v29_v7 = vshrl.u32 %v28_v6, 7  ;;  %s98_s2 = sshll.u32 %s149_s0, 4  ;;  %s99_s2 = int_to_ptr.vmem [resolvable:$true] %s98_s2 }
   0x5   :  { %s121_s19 = scalar_lea.vmem %s99_s2, 256  ;;  %p126_p1 = scmp.lt.s32.totalorder %s99_s2, %s99_s2 }
   0x6   :  { %19 = vperm.xlu0 %117, %v16_v3   ;;  %119 = vset.pattern.permute.xlu1 %v147_v4  ;;  %v30_v8 = vsub.s32 0, %v29_v7  ;;  %v40_v11 = vsub.s32 1, %v29_v7  ;;  %v50_v12 = vsub.s32 2, %v29_v7  ;;  %v60_v21 = vsub.s32 3, %v29_v7  ;;  %p122_p0 = scmp.ne.s32.totalorder %s99_s2, %s121_s19  ;;  %p127_p2 = scmp.lt.s32.totalorder %s121_s19, %s121_s19 }
   0x7   :  { %45 = vperm.xlu1 %119, %v15_v0  }
   0x8   :  { %v31_v13 = vrot.slane %v22_v9, %v30_v8  ;;  %v70_v14 = vrot.slane %v109_v10, %v30_v8  ;;  %v41_v17 = vrot.slane %v22_v9, %v40_v11  ;;  %v76_v18 = vrot.slane %v109_v10, %v40_v11  ;;  %p128_p3 = por %p127_p2, %p126_p1 }
   0x9   :  { %v51_v19 = vrot.slane %v22_v9, %v50_v12  ;;  %v82_v20 = vrot.slane %v109_v10, %v50_v12  ;;  %v61_v32 = vrot.slane %v22_v9, %v60_v21  ;;  %v88_v33 = vrot.slane %v109_v10, %v60_v21 }
   0xa   :  { %120 = vset.pattern.permute.xlu0 %v148_v5  ;;  %p129_p4 = pnand %p128_p3, %p122_p0 }
   0xb   :  { %55 = vperm.xlu0 %120, %v15_v0  }
  0x81   :  { %v26_v15 = vpop.permute.xlu0 %25  ;;  %v36_v16 = vpop.permute.xlu1 %35 }
  0x82   :  { %v32_v22 = vmul.f32 %v31_v13, %v26_v15  ;;  %v71_v23 = vmul.f32 %v70_v14, %v26_v15  ;;  %v42_v25 = vmul.f32 %v41_v17, %v36_v16  ;;  %v77_v26 = vmul.f32 %v76_v18, %v36_v16 }
  0x85   :  { %v20_v24 = vpop.permute.xlu0 %19 }
  0x86   :  { %v33_v27 = vadd.f32 %v32_v22, %v20_v24  ;;  %v72_v28 = vadd.f32 %v71_v23, %v20_v24  ;;  %v46_v29 = vpop.permute.xlu1 %45 }
  0x87   :  { %v52_v30 = vmul.f32 %v51_v19, %v46_v29  ;;  %v83_v31 = vmul.f32 %v82_v20, %v46_v29 }
  0x88   :  { %v43_v34 = vadd.f32 %v42_v25, %v33_v27  ;;  %v78_v35 = vadd.f32 %v77_v26, %v72_v28 }
  0x8a   :  { %v53_v36 = vadd.f32 %v52_v30, %v43_v34  ;;  %v84_v37 = vadd.f32 %v83_v31, %v78_v35  ;;  %v56_v38 = vpop.permute.xlu0 %55 }
  0x8b   :  { %v62_v39 = vmul.f32 %v61_v32, %v56_v38  ;;  %v89_v40 = vmul.f32 %v88_v33, %v56_v38 }
  0x8d   :  { %v63_v41 = vadd.f32 %v62_v39, %v53_v36  ;;  %v90_v42 = vadd.f32 %v89_v40, %v84_v37 }
  0x8f   :  { %64 = vst [vmem:[#allocation2] sm:$0xff] %v63_v41  ;;  %92 = vst [vmem:[#allocation2 + $0x8] sm:$0xff] %v90_v42 }
  0x90   :  { %132 = shalt.err (!%p129_p4)
}
  0x91   :  { %s133_s22 = scalar_lea.hbm %s199_s3, 256 }
  0x92   :  { %p134_p5 = scmp.ne.s32.totalorder %s199_s3, %s133_s22  ;;  %p137_p6 = scmp.lt.u32.totalorder %s133_s22, %s199_s3 }
  0x94   :  { %p139_p7 = pnand %p137_p6, %p134_p5 }
  0x96   :  { %142 = shalt.err (!%p139_p7)
}
  0x97   :  { %s150_s27 = smov 128   ;;  %s151_s28 = smov 8  }
  0x98   :  { %104 = dma.vmem_to_hbm [thread:$0]  %s99_s2, 256, %s199_s3, [#allocation3], %s150_s27, %s150_s27, %s151_s28  }
  0x99   :  { %143 = dma.done.wait [#allocation3], 256  }
  0x9a   :  { %144 = vsyncadd [#allocation3], 4294967040 }
  0x9b   :  { %108 = vsyncpa [#allocation3], 1 }

</bundles_post_ra>
